<compile_context>
chip_gen: v6e
topology: v6e:2x2x1
jax: 0.10.0
libtpu: 0.0.40
codegen_flags: <defaults>
</compile_context>

<pallas_src>
import math

import jax
import jax.numpy as jnp
from jax.experimental import pallas as pl
from jax.experimental.pallas import tpu as pltpu


def _unflatten_kernel(x_ref, o_ref):
    # x_ref: (1, tp, tc) VMEM tile ; o_ref: (1, tc, tp) VMEM tile (lane-dense on tp)
    o_ref[...] = jnp.transpose(x_ref[...], (0, 2, 1))  # XLU transpose, no reshape copy


def _pick_tile(dim, target=512):
    """Largest multiple-of-128 divisor of `dim` that is <= target; else the full dim."""
    if dim % 128 == 0:
        t = min(dim, target)
        t -= t % 128
        while t >= 128:
            if dim % t == 0:
                return t
            t -= 128
        return 128  # unreachable since dim % 128 == 0
    return dim  # full-dim block (exempt from the (8,128) constraint)


def unflatten_layer(x, h=0):
    """JAX/Pallas equivalent of UnflattenLayer.forward."""
    if x.ndim == 4:
        # already NCHW -> identity
        return x
    if x.ndim != 3:
        raise ValueError(f"Unsupported input shape: {x.shape}")

    n, p, c = x.shape
    hh = h or math.isqrt(p)
    ww = p // hh
    assert hh * ww == p, f"p={p} not divisible into h={hh}, w={ww}"

    tp = _pick_tile(p)
    tc = _pick_tile(c)
    grid = (n, pl.cdiv(c, tc), pl.cdiv(p, tp))

    itemsize = jnp.dtype(x.dtype).itemsize
    # double-buffered input tile + double-buffered output tile
    footprint = 2 * 2 * tp * tc * itemsize
    vmem_limit = int(min(max(2 * footprint, 32 * 1024 * 1024), 64 * 1024 * 1024))

    # Lane-dense output: (N, C, P).  Reshape to (N, C, H, W) outside the kernel (free).
    out_ncp = pl.pallas_call(
        _unflatten_kernel,
        out_shape=jax.ShapeDtypeStruct((n, c, p), x.dtype),
        grid=grid,
        in_specs=[pl.BlockSpec((1, tp, tc), lambda i, cb, pb: (i, pb, cb))],
        out_specs=pl.BlockSpec((1, tc, tp), lambda i, cb, pb: (i, cb, pb)),
        compiler_params=pltpu.CompilerParams(
            dimension_semantics=("parallel", "parallel", "parallel"),
            vmem_limit_bytes=vmem_limit,
        ),
    )(x)

    return out_ncp.reshape(n, c, hh, ww)


if __name__ == "__main__":
    key = jax.random.PRNGKey(0)

    # --- 3D case, tiny shapes (full-block fallback path): (N, P, C) = (2, 16, 8) ---
    n, p, c = 2, 16, 8
    x3 = jax.random.normal(key, (n, p, c), dtype=jnp.float32)
    out = jax.block_until_ready(unflatten_layer(x3))
    hh = math.isqrt(p)
    ref = jnp.transpose(x3, (0, 2, 1)).reshape(n, c, hh, p // hh)
    assert out.shape == (n, c, hh, p // hh)
    assert jnp.array_equal(out, ref)

    # --- 3D case, 128-aligned shapes (tiled path): (N, P, C) = (2, 256, 128) ---
    n2, p2, c2 = 2, 256, 128
    x3b = jax.random.normal(jax.random.PRNGKey(2), (n2, p2, c2), dtype=jnp.float32)
    out_b = jax.block_until_ready(unflatten_layer(x3b))
    hh2 = math.isqrt(p2)
    ref_b = jnp.transpose(x3b, (0, 2, 1)).reshape(n2, c2, hh2, p2 // hh2)
    assert out_b.shape == (n2, c2, hh2, p2 // hh2)
    assert jnp.array_equal(out_b, ref_b)

    # --- explicit h (non-square grid): h=4 -> (h, w) = (4, 64) for p2=256 ---
    out_h = jax.block_until_ready(unflatten_layer(x3b, h=4))
    ref_h = jnp.transpose(x3b, (0, 2, 1)).reshape(n2, c2, 4, p2 // 4)
    assert jnp.array_equal(out_h, ref_h)

    # --- 4D case: identity pass-through ---
    x4 = jax.random.normal(jax.random.PRNGKey(1), (2, 4, 16, 16), dtype=jnp.float32)
    out4 = jax.block_until_ready(unflatten_layer(x4))
    assert jnp.array_equal(out4, x4)

    print("KERNEL_OK")
</pallas_src>

<mosaic_0001>
module attributes {stable_mosaic.version = 11 : i64} {
  func.func @_unflatten_kernel(%arg0: i32, %arg1: i32, %arg2: i32, %arg3: memref<1x16x8xf32, #tpu.memory_space<vmem>>, %arg4: memref<1x8x16xf32, #tpu.memory_space<vmem>>) attributes {dimension_semantics = [#tpu.dimension_semantics<parallel>, #tpu.dimension_semantics<parallel>, #tpu.dimension_semantics<parallel>], iteration_bounds = array<i64: 2, 1, 1>, scalar_prefetch = 0 : i64, scratch_operands = 0 : i64, tpu.core_type = #tpu.core_type<tc>, window_params = [{transform_indices = @transform_0, window_bounds = array<i64: 1, 16, 8>}, {transform_indices = @transform_1, window_bounds = array<i64: 1, 8, 16>}]} {
    %c0 = arith.constant 0 : index
    %c0_0 = arith.constant 0 : index
    %c0_1 = arith.constant 0 : index
    %0 = vector.load %arg3[%c0, %c0_0, %c0_1] : memref<1x16x8xf32, #tpu.memory_space<vmem>>, vector<1x16x8xf32>
    %1 = tpu.transpose %0, [0, 2, 1] : vector<1x16x8xf32> -> vector<1x8x16xf32>
    %c0_2 = arith.constant 0 : index
    %c0_3 = arith.constant 0 : index
    %c0_4 = arith.constant 0 : index
    %2 = vector.load %arg4[%c0_2, %c0_3, %c0_4] : memref<1x8x16xf32, #tpu.memory_space<vmem>>, vector<1x8x16xf32>
    tpu.vector_store %arg4[%c0_2, %c0_3, %c0_4], %1 {strides = array<i32>} : memref<1x8x16xf32, #tpu.memory_space<vmem>>, vector<1x8x16xf32>,
    return
  }
  func.func @transform_0(%arg0: i32, %arg1: i32, %arg2: i32) -> (i32, i32, i32) {
    %c0_i32 = arith.constant 0 : i32
    return %arg0, %arg2, %arg1 : i32, i32, i32
  }
  func.func @transform_1(%arg0: i32, %arg1: i32, %arg2: i32) -> (i32, i32, i32) {
    %c0_i32 = arith.constant 0 : i32
    return %arg0, %arg1, %arg2 : i32, i32, i32
  }
}

</mosaic_0001>

<bundles_post_ra>
// kernel: tpu_custom_call.1
= control target key start
LH: loop header
LB: loop body
LE: loop exit
PB: predicated region body
PF: predicated region fallthrough
CT: control target
= control target key end

     0   :  { %6 = vsyncpa [#allocation3], 0  ;;  %s561_s0 = inlined_call_operand.vmem [shape: f32[2,16,8], index: 0, kind: input, shape index: {}]   ;;  %s562_s1 = inlined_call_operand.hbm [shape: f32[2,8,16], index: 1, kind: output, shape index: {}]  }
   0x1   :  { %8 = vsyncpa [#allocation3 + $0x1], 0  ;;  %s456_s6 = smov 0   ;;  %s458_s7 = smov 0  }
   0x2   :  { %s460_s8 = smov 0   ;;  %s462_s9 = smov 0  }
   0x3   :  { %s464_s10 = smov 0   ;;  %s466_s11 = smov 0  }
   0x4 LB: > { %s298_s12 = sadd.s32 4294967295, %s443_s11   ;;  %s299_s13 = sadd.s32 4294967294, %s443_s11   ;;  %s443_s11 = sphi %s466_s11, %s14_s11   ;;  %s439_s10 = sphi %s464_s10, %s569_s10   ;;  %s435_s9 = sphi %s462_s9, %s568_s9   ;;  %s431_s8 = sphi %s460_s8, %s567_s8   ;;  %s427_s7 = sphi %s458_s7, %s566_s7   ;;  %s423_s6 = sphi %s456_s6, %s565_s6  }
   0x5   : > { %s33_s14 = sadd.s32 1, %s439_s10  ;;  %s74_s15 = sadd.s32 1, %s431_s8 }
   0x6   : > { %p35_p0 = scmp.ge.s32.totalorder %s33_s14, 2  ;;  %p84_p1 = scmp.ne.s32.totalorder %s431_s8, %s427_s7 }
   0x7   : > { %p85_p2 = scmp.eq.s32.totalorder %s298_s12, 1  ;;  %p90_p3 = scmp.ne.s32.totalorder %s427_s7, %s423_s6 }
   0x8   : > { %s571_s14 = smov (%p35_p0, %s33_s14), 0  ;;  %p91_p5 = scmp.eq.s32.totalorder %s299_s13, 1 }
   0x9   : > { %p496_p4 = por %p85_p2, %p84_p1  ;;  %s67_s17 = ssub.s32 %s439_s10, %s571_s14 }
   0xa   : > { %p302_p6 = scmp.ge.s32.totalorder %s443_s11, 1  ;;  %p72_p7 = scmp.eq.s32.totalorder %s67_s17, 0 }
   0xb   : > { %p503_p8 = por %p91_p5, %p90_p3  ;;  %p125_p9 = scmp.lt.s32.totalorder %s443_s11, 3 }
   0xc   : > { %s509_s19 = scalar_select %p72_p7, %s431_s8, %s74_s15  }
   0xd   : > { %p126_p10 = pnand %p302_p6, %p125_p9 }
   0xe   : > { %p153_p11 = scmp.lt.s32.totalorder (!%p126_p10), %s435_s9, 1  ;;  %s149_s25 = sand.u32 (!%p126_p10), 1, %s427_s7  }
   0xf   : > { %129 = sbr.rel (%p126_p10) target bundleno = 163 (0xa3), region = 24  ;;  %s303_s26 = sshll.u32 (!%p126_p10), %s149_s25, 3 }
  0x10   : > { %s307_s27 = sshll.u32 (!%p126_p10), %s435_s9, 7  ;;  %s151_s28 = scalar_lea.vmem (!%p126_p10), [#allocation2], %s303_s26 }
  0x11   : > { %s217_s29 = sshll.u32 (!%p126_p10), %s151_s28, 4  ;;  %s521_s3 = scalar_lea.hbm (!%p126_p10), %s562_s1, %s307_s27  ;;  %s218_s29 = int_to_ptr.vmem [resolvable:$true] %s217_s29 }
  0x12   : > { %s202_s4 = scalar_lea.sflag (!%p126_p10), [#allocation3], %s149_s25  ;;  %s367_s5 = scalar_lea.vmem (!%p126_p10), %s218_s29, 128 }
  0x13   : > { %p368_p12 = scmp.ne.s32.totalorder (!%p126_p10), %s218_s29, %s367_s5  ;;  %s445_s12 = smov (!%p126_p10), [#allocation2]  }
  0x14   : > { %s154_s20 = scalar_select %p153_p11, %s435_s9, 1  ;;  %vm199_vm0 = vcmask 130048  }
  0x15   : > { %p369_p13 = pnand %p368_p12, %p496_p4  ;;  %s371_s13 = sshll.u32 %s445_s12, 4  ;;  %s372_s13 = int_to_ptr.vmem [resolvable:$false] %s371_s13 }
  0x16   : > { %s310_s21 = sshll.u32 %s154_s20, 4  ;;  %s373_s9 = scalar_lea.vmem %s372_s13, 256 }
  0x17   : > { %s163_s24 = scalar_lea.vmem %s561_s0, %s310_s21  ;;  %p370_p0 = pneg %p369_p13 }
  0x18   : > { %v165_v0 = vld [vmem:[%s163_s24] sm:$0xff]  ;;  %v166_v1 = vld [vmem:[%s163_s24 + $0x8] sm:$0xff]  ;;  %p374_p1 = scmp.lt.s32.totalorder %s218_s29, %s372_s13  ;;  %p375_p2 = scmp.lt.s32.totalorder %s373_s9, %s367_s5 }
  0x19   : > { %167 = vxpose.xlu0.b32.start [1/2] (short) (narrow) %v165_v0, 8 }
  0x1a   : > { %p376_p3 = por %p375_p2, %p374_p1 }
  0x1c   : > { %p377_p5 = pnand %p376_p3, %p370_p0 }
  0x1d   : > { %168 = vxpose.xlu0.b32.end [2/2] (short) (narrow) %v166_v1, 8 }
  0x95   : > { %v183_v2 = vpop.trf.xlu0 }
  0x96   : > { %200 = vst.msk [vmem:[%s151_s28] sm:$0xff] %vm199_vm0, %v183_v2 }
  0x97   : > { %380 = shalt.err (!%p377_p5)
}
  0x98   : > { %s381_s15 = scalar_lea.hbm %s521_s3, 128  ;;  %s385_s21 = scalar_lea.hbm %s562_s1, 256 }
  0x99   : > { %p382_p6 = scmp.ne.s32.totalorder %s521_s3, %s381_s15  ;;  %p386_p10 = scmp.lt.s32.totalorder %s521_s3, %s562_s1 }
  0x9a   : > { %p387_p11 = scmp.lt.s32.totalorder %s385_s21, %s381_s15 }
  0x9b   : > { %p383_p7 = pnand %p382_p6, %p496_p4 }
  0x9c   : > { %p388_p12 = por %p387_p11, %p386_p10 }
  0x9d   : > { %p384_p9 = pneg %p383_p7 }
  0x9f   : > { %p389_p13 = pnand %p388_p12, %p384_p9 }
  0xa1   : > { %392 = shalt.err (!%p389_p13)
}
  0xa2   : > { %311 = dma.vmem_to_hbm [thread:$0]  (%p496_p4), %s218_s29, 128, %s521_s3, %s202_s4  }
  0xa3 PF: > { %p317_p0 = scmp.ge.s32.totalorder %s443_s11, 2  ;;  %s229_s24 = sand.u32 1, %s423_s6  }
  0xa4   : > { %s230_s25 = scalar_lea.sflag [#allocation3], %s229_s24 }
  0xa5   : > { %p314_p1 = pnand %p317_p0, %p503_p8 }
  0xa7   : > { %p315_p2 = pneg %p314_p1 }
  0xa9   : > { %418 = dma.done.wait (%p315_p2), %s230_s25, 128  }
  0xaa   : > { %420 = vsyncadd (%p315_p2), %s230_s25, 4294967168  ;;  %s14_s11 = sadd.s32 1, %s443_s11   ;;  %s565_s6 = smov %s427_s7 }
  0xab   : > { %p11_p3 = scmp.ge.s32.totalorder %s14_s11, 4   ;;  %s566_s7 = smov %s431_s8 }
  0xac   : > { %s567_s8 = smov %s509_s19  ;;  %s568_s9 = smov %s439_s10 }
  0xad   : > { %s569_s10 = smov %s571_s14  ;;  %13 = sbr.rel (!%p11_p3) target bundleno = 4 (0x4), region = 59 }
  0xb2   :  { %235 = vsyncpa [#allocation3], 1 }
  0xb3   :  { %237 = vsyncpa [#allocation3 + $0x1], 1 }

</bundles_post_ra>
